<compile_context>
chip_gen: v7x
topology: tpu7x:2x2x1
jax: 0.10.0
libtpu: 0.0.40
codegen_flags: <defaults>
</compile_context>

<pallas_src>
import functools

import jax
import jax.numpy as jnp
from jax.experimental import pallas as pl
from jax.experimental.pallas import tpu as pltpu

# Fallback scoped-VMEM budget if the hardware can't be queried. Safe on every
# generation (v7x: 64 MiB physical per TC; v5e/v6e: 128 MiB).
_DEFAULT_VMEM_BUDGET = 32 * 1024 * 1024

# Aim for roughly this much HBM traffic (input + output) per grid step so the
# fixed ~0.35 us per-step overhead stays in the low single-digit percent even
# on v7x's ~3.2 TB/s HBM.
_TARGET_STEP_HBM_BYTES = 32 * 1024 * 1024

# Keep at least this many grid blocks when the row count allows, so the
# pipeline stays busy and both v7x TensorCores receive work.
_MIN_GRID_BLOCKS = 8


def _vmem_budget_bytes() -> int:
    """Generation-aware VMEM budget: ~3/4 of physical per-core VMEM."""
    try:
        phys = int(pltpu.get_tpu_info().vmem_capacity_bytes)
    except Exception:
        return _DEFAULT_VMEM_BUDGET
    if phys <= 0:
        return _DEFAULT_VMEM_BUDGET
    # ~48 MiB on v7x (64 MiB physical), ~96 MiB on v5e/v6e (128 MiB physical).
    return max(_DEFAULT_VMEM_BUDGET, (phys * 3) // 4)


def _sublane_multiple(itemsize: int) -> int:
    """Native sublane packing for the input dtype."""
    if itemsize >= 4:
        return 8
    if itemsize == 2:
        return 16
    return 32


def _rmsnorm_kernel(x_ref, w_ref, o_ref, *, eps: float):
    # x_ref : (block_rows, dim)   input tile (any float dtype)
    # w_ref : (1, dim)            precomputed (1 + weight) in float32
    # o_ref : (block_rows, dim)   output tile, same dtype as input
    x = x_ref[...].astype(jnp.float32)                       # x.float()
    ms = jnp.mean(x * x, axis=-1, keepdims=True)             # mean(x^2, -1)
    inv = jax.lax.rsqrt(ms + eps)                            # rsqrt(. + eps) -> EUP
    o_ref[...] = (x * inv * w_ref[...]).astype(o_ref.dtype)  # * (1+w), .type_as(x)


def _pick_block_rows(rows: int, dim: int, itemsize: int) -> int:
    """Row-tile size: VMEM-safe, lane/sublane friendly, pipeline friendly."""
    mult = _sublane_multiple(itemsize)
    vmem_budget = _vmem_budget_bytes()

    # Per-row VMEM cost across the pipeline:
    #   2x double-buffered input tile + 2x double-buffered output tile
    #   + ~2 live f32 temporaries (x.astype(f32) and the f32 result pre-cast).
    bytes_per_row = dim * (4 * itemsize + 2 * 4)
    max_rows_vmem = max(mult, vmem_budget // max(bytes_per_row, 1))

    # Bytes-based step-size target: ~_TARGET_STEP_HBM_BYTES of in+out HBM
    # traffic per grid step (instead of a fixed row cap).
    hbm_bytes_per_row = max(dim * 2 * itemsize, 1)
    target_rows = max(mult, _TARGET_STEP_HBM_BYTES // hbm_bytes_per_row)

    block_rows = min(max_rows_vmem, target_rows)

    # Never collapse to a tiny grid: keep >= _MIN_GRID_BLOCKS blocks when the
    # row count allows, so DMA/compute overlap and v7x's 2 TCs both get work.
    if rows > _MIN_GRID_BLOCKS * mult:
        block_rows = min(block_rows, pl.cdiv(rows, _MIN_GRID_BLOCKS))

    block_rows = max(mult, (block_rows // mult) * mult)

    if block_rows >= rows:
        # Small input. Prefer at least 2 blocks (pipelining) while keeping the
        # sublane dim a multiple of 8; otherwise a single full-extent block
        # (always legal, even if rows is not a multiple of 8).
        if rows >= 16 and rows % 8 == 0:
            return max(8, ((rows // 2) // 8) * 8)
        return rows
    return block_rows


def rmsnorm(x: jax.Array, weight: jax.Array, eps: float = 1e-6,
            block_rows: int | None = None) -> jax.Array:
    """RMSNorm over the last axis of `x`, matching the PyTorch module."""
    orig_shape = x.shape
    dim = orig_shape[-1]
    assert weight.shape == (dim,)

    x2d = x.reshape(-1, dim)
    rows = x2d.shape[0]
    itemsize = jnp.dtype(x.dtype).itemsize

    if block_rows is None:
        block_rows = _pick_block_rows(rows, dim, itemsize)
    else:
        block_rows = min(block_rows, rows)
        if block_rows < rows:
            block_rows = max(8, (block_rows // 8) * 8)   # keep sublane-legal

    # Precompute (1 + weight) in f32 once; the kernel only multiplies.
    w_plus_1 = (1.0 + weight.astype(jnp.float32)).reshape(1, dim)

    vmem_limit = _vmem_budget_bytes()

    # No input padding: cdiv grid; Pallas masks the ragged last block's writes
    # (garbage rows in that block cannot contaminate valid rows: per-row norm).
    grid = (pl.cdiv(rows, block_rows),)
    out2d = pl.pallas_call(
        functools.partial(_rmsnorm_kernel, eps=eps),
        out_shape=jax.ShapeDtypeStruct((rows, dim), x.dtype),
        grid_spec=pltpu.PrefetchScalarGridSpec(
            num_scalar_prefetch=0,
            grid=grid,
            in_specs=[
                pl.BlockSpec((block_rows, dim), lambda i: (i, 0)),
                pl.BlockSpec((1, dim), lambda i: (0, 0)),
            ],
            out_specs=pl.BlockSpec((block_rows, dim), lambda i: (i, 0)),
        ),
        compiler_params=pltpu.CompilerParams(
            # "parallel" lets multi-TC chips (v7x) shard the row grid.
            dimension_semantics=("parallel",),
            vmem_limit_bytes=vmem_limit),
    )(x2d, w_plus_1)

    return out2d.reshape(orig_shape)


def rmsnorm_reference(x, weight, eps=1e-6):
    xf = x.astype(jnp.float32)
    inv = jax.lax.rsqrt(jnp.mean(xf * xf, axis=-1, keepdims=True) + eps)
    out = xf * inv * (1.0 + weight.astype(jnp.float32))
    return out.astype(x.dtype)


if __name__ == "__main__":
    key = jax.random.PRNGKey(0)
    kx, kw = jax.random.split(key)

    batch, seq, hidden = 2, 8, 32
    # Input in bf16 to exercise the float()/type_as(x) round trip.
    x = jax.random.normal(kx, (batch, seq, hidden), dtype=jnp.bfloat16)
    # nn.Parameter(torch.zeros(dim)) -> shape (hidden,). Use a deterministic
    # nonzero weight so the (1 + weight) scaling path is actually exercised.
    weight = (0.1 * jax.random.normal(kw, (hidden,))).astype(jnp.float32)

    out = rmsnorm(x, weight, eps=1e-6)
    out = jax.block_until_ready(out)

    ref = rmsnorm_reference(x, weight, eps=1e-6)
    assert out.shape == x.shape and out.dtype == x.dtype
    assert jnp.allclose(out.astype(jnp.float32), ref.astype(jnp.float32),
                        atol=1e-2, rtol=1e-2)
    print("KERNEL_OK")
</pallas_src>

<mosaic_0001>
module attributes {stable_mosaic.version = 11 : i64} {
  func.func @_rmsnorm_kernel(%arg0: i32, %arg1: memref<8x32xbf16, #tpu.memory_space<vmem>>, %arg2: memref<1x32xf32, #tpu.memory_space<vmem>>, %arg3: memref<8x32xbf16, #tpu.memory_space<vmem>>) attributes {dimension_semantics = [#tpu.dimension_semantics<parallel>], iteration_bounds = array<i64: 2>, scalar_prefetch = 0 : i64, scratch_operands = 0 : i64, tpu.core_type = #tpu.core_type<tc>, window_params = [{transform_indices = @transform_0, window_bounds = array<i64: 8, 32>}, {pipeline_mode = #tpu.pipeline_mode<synchronous>, transform_indices = @transform_1, window_bounds = array<i64: 1, 32>}, {transform_indices = @transform_2, window_bounds = array<i64: 8, 32>}]} {
    %c0 = arith.constant 0 : index
    %c0_0 = arith.constant 0 : index
    %0 = vector.load %arg1[%c0, %c0_0] : memref<8x32xbf16, #tpu.memory_space<vmem>>, vector<8x32xbf16>
    %1 = arith.extf %0 : vector<8x32xbf16> to vector<8x32xf32>
    %2 = arith.mulf %1, %1 : vector<8x32xf32>
    %cst = arith.constant dense<0.000000e+00> : vector<8xf32>
    %3 = vector.multi_reduction <add>, %2, %cst [1] : vector<8x32xf32> to vector<8xf32>
    %4 = vector.shape_cast %3 : vector<8xf32> to vector<8x1xf32>
    %cst_1 = arith.constant 3.200000e+01 : f32
    %5 = vector.broadcast %cst_1 : f32 to vector<8x1xf32>
    %6 = arith.divf %4, %5 : vector<8x1xf32>
    %cst_2 = arith.constant 9.99999997E-7 : f32
    %7 = vector.broadcast %cst_2 : f32 to vector<8x1xf32>
    %8 = arith.addf %6, %7 : vector<8x1xf32>
    %9 = math.rsqrt %8 : vector<8x1xf32>
    %10 = vector.broadcast %9 : vector<8x1xf32> to vector<8x32xf32>
    %11 = arith.mulf %1, %10 : vector<8x32xf32>
    %c0_3 = arith.constant 0 : index
    %c0_4 = arith.constant 0 : index
    %12 = vector.load %arg2[%c0_3, %c0_4] : memref<1x32xf32, #tpu.memory_space<vmem>>, vector<1x32xf32>
    %13 = vector.broadcast %12 : vector<1x32xf32> to vector<8x32xf32>
    %14 = arith.mulf %11, %13 : vector<8x32xf32>
    %15 = arith.truncf %14 : vector<8x32xf32> to vector<8x32xbf16>
    %c0_5 = arith.constant 0 : index
    %c0_6 = arith.constant 0 : index
    %16 = vector.load %arg3[%c0_5, %c0_6] : memref<8x32xbf16, #tpu.memory_space<vmem>>, vector<8x32xbf16>
    tpu.vector_store %arg3[%c0_5, %c0_6], %15 {strides = array<i32>} : memref<8x32xbf16, #tpu.memory_space<vmem>>, vector<8x32xbf16>,
    return
  }
  func.func @transform_0(%arg0: i32) -> (i32, i32) {
    %c0_i32 = arith.constant 0 : i32
    %c0_i32_0 = arith.constant 0 : i32
    return %arg0, %c0_i32 : i32, i32
  }
  func.func @transform_1(%arg0: i32) -> (i32, i32) {
    %c0_i32 = arith.constant 0 : i32
    %c0_i32_0 = arith.constant 0 : i32
    %c0_i32_1 = arith.constant 0 : i32
    return %c0_i32, %c0_i32_0 : i32, i32
  }
  func.func @transform_2(%arg0: i32) -> (i32, i32) {
    %c0_i32 = arith.constant 0 : i32
    %c0_i32_0 = arith.constant 0 : i32
    return %arg0, %c0_i32 : i32, i32
  }
}

</mosaic_0001>

<bundles_post_ra>
// kernel: tpu_custom_call.1
= control target key start
LH: loop header
LB: loop body
LE: loop exit
PB: predicated region body
PF: predicated region fallthrough
CT: control target
= control target key end

     0   :  { %7 = vsyncpa [#allocation3], 0  ;;  %s606_s0 = inlined_call_operand.hbm [shape: bf16[16,32], index: 0, kind: input, shape index: {}]   ;;  %s607_s1 = inlined_call_operand.vmem [shape: f32[1,32], index: 1, kind: input, shape index: {}]   ;;  %s608_s2 = inlined_call_operand.hbm [shape: bf16[16,32], index: 2, kind: output, shape index: {}]  }
   0x1   :  { %9 = vsyncpa [#allocation3 + $0x1], 0 }
   0x2   :  { %10 = vsyncpa [#allocation4], 0 }
   0x3   :  { %12 = vsyncpa [#allocation4 + $0x1], 0  ;;  %s442_s9 = smov 0   ;;  %s444_s10 = smov 0  }
   0x4   :  { %s446_s11 = smov 0   ;;  %s448_s12 = smov 0  }
   0x5 LB: > { %s463_s13 = sadd.s32 4294967295, %s423_s12   ;;  %s266_s14 = sadd.s32 4294967294, %s423_s12   ;;  %s423_s12 = sphi %s448_s12, %s623_s12   ;;  %s419_s11 = sphi %s446_s11, %s622_s11   ;;  %s415_s10 = sphi %s444_s10, %s621_s10   ;;  %s411_s9 = sphi %s442_s9, %s620_s9  }
   0x6   : > { %s467_s15 = sadd.s32 1, %s423_s12   ;;  %s25_s16 = sadd.s32 1, %s419_s11 }
   0x7   : > { %s22_s17 = ssub.s32 %s423_s12, %s467_s15  ;;  %p32_p0 = scmp.ne.s32.totalorder %s419_s11, %s415_s10 }
   0x8   : > { %p23_p1 = scmp.eq.s32.totalorder %s22_s17, 0  ;;  %p33_p2 = scmp.eq.s32.totalorder %s423_s12, 0 }
   0x9   : > { %p38_p3 = scmp.ne.s32.totalorder %s415_s10, %s411_s9  ;;  %p39_p4 = scmp.eq.s32.totalorder %s463_s13, 0 }
   0xa   : > { %s479_s18 = scalar_select %p23_p1, %s419_s11, %s25_s16  }
   0xb   : > { %p481_p5 = por %p33_p2, %p32_p0  ;;  %p485_p6 = por %p39_p4, %p38_p3 }
   0xc   : > { %p83_p7 = scmp.eq.s32.totalorder %s463_s13, 1  ;;  %p89_p8 = scmp.eq.s32.totalorder %s266_s14, 1 }
   0xd   : > { %p291_p10 = scmp.lt.s32.totalorder %s423_s12, 2  ;;  %s112_s23 = sand.u32 1, %s419_s11  }
   0xe   : > { %p492_p11 = por %p83_p7, %p32_p0  ;;  %p496_p12 = por %p89_p8, %p38_p3 }
   0xf   : > { %s270_s24 = sshll.u32 %s423_s12, 6  ;;  %s269_s25 = sshll.u32 %s112_s23, 2 }
  0x10   : > { %s612_s21 = scalar_select %p492_p11, 1, 0 }
  0x11   : > { %s613_s22 = scalar_select %p496_p12, 1, 0 }
  0x12   : > { %s505_s28 = scalar_lea.hbm %s606_s0, %s270_s24  ;;  %s116_s29 = scalar_lea.vmem [#allocation2], %s269_s25 }
  0x13   : > { %s123_s30 = sshll.u32 %s116_s29, 4  ;;  %p509_p13 = pnand %p291_p10, %p481_p5  ;;  %s513_s30 = int_to_ptr.vmem [resolvable:$true] %s123_s30 }
  0x14   : > { %s113_s4 = scalar_lea.sflag [#allocation3], %s112_s23  ;;  %s327_s5 = scalar_lea.hbm %s505_s28, 64 }
  0x15   : > { %p328_p2 = scmp.ne.s32.totalorder %s505_s28, %s327_s5  ;;  %p329_p3 = pneg %p509_p13 }
  0x16   : > { %s332_s8 = scalar_lea.hbm %s606_s0, 128  ;;  %p333_p5 = scmp.lt.u32.totalorder %s505_s28, %s606_s0 }
  0x17   : > { %p330_p4 = pnand %p329_p3, %p328_p2  ;;  %p334_p8 = scmp.lt.u32.totalorder %s332_s8, %s327_s5 }
  0x18   : > { %p336_p9 = scmp.lt.u32.totalorder %s327_s5, %s505_s28 }
  0x19   : > { %p331_p7 = pneg %p330_p4  ;;  %p335_p10 = por %p334_p8, %p333_p5 }
  0x1b   : > { %p337_p0 = por %p336_p9, %p335_p10 }
  0x1d   : > { %p338_p1 = pnand %p337_p0, %p331_p7 }
  0x1f   : > { %341 = shalt.err (!%p338_p1)
}
  0x20   : > { %s342_s17 = scalar_lea.vmem %s513_s30, 64  ;;  %s425_s19 = smov [#allocation2]  }
  0x21   : > { %p343_p2 = scmp.ne.s32.totalorder %s513_s30, %s342_s17  ;;  %s347_s23 = sshll.u32 %s425_s19, 4  ;;  %s348_s23 = int_to_ptr.vmem [resolvable:$false] %s347_s23 }
  0x22   : > { %s349_s24 = scalar_lea.vmem %s348_s23, 128  ;;  %p350_p11 = scmp.lt.s32.totalorder %s513_s30, %s348_s23 }
  0x23   : > { %p345_p4 = pnand %p343_p2, %p329_p3  ;;  %p351_p5 = scmp.lt.s32.totalorder %s349_s24, %s342_s17 }
  0x25   : > { %p346_p12 = pneg %p345_p4  ;;  %p352_p8 = por %p351_p5, %p350_p11 }
  0x27   : > { %p353_p9 = pnand %p352_p8, %p346_p12 }
  0x29   : > { %356 = shalt.err (!%p353_p9)
}
  0x2a   : > { %286 = dma.hbm_to_vmem [thread:$0]  (!%p509_p13), %s505_s28, 64, %s513_s30, %s113_s4  }
  0x2b   : > { %p615_p0 = scmp.lt.s32.totalorder %s423_s12, 3  ;;  %p616_p1 = scmp.ge.s32.totalorder %s423_s12, 1 }
  0x2d   : > { %p129_p3 = pnand %p616_p1, %p615_p0 }
  0x2e   : > { %s547_s25 = sand.u32 (!%p129_p3), 1, %s415_s10  }
  0x2f   : > { %132 = sbr.rel (%p129_p3) target bundleno = 238 (0xee), region = 28  ;;  %s272_s26 = sshll.u32 (!%p129_p3), %s547_s25, 2 }
  0x30   : > { %s135_s27 = scalar_lea.sflag (!%p129_p3), [#allocation3], %s547_s25  ;;  %s138_s29 = scalar_lea.vmem (!%p129_p3), [#allocation2], %s272_s26 }
  0x36   : > { %402 = dma.done.wait (%p485_p6), %s135_s27, 64  }
  0x37   : > { %404 = vsyncadd (%p485_p6), %s135_s27, 4294967232  ;;  %v159_v0 = vld [vmem:[%s138_s29] sm:$0xf]  ;;  %vm162_vm0 = vcmask 261120   ;;  %s276_s20 = sshll.u32 %s463_s13, 6  ;;  %s158_s3 = scalar_lea.vmem [#allocation5], %s272_s26 }
  0x38   : > { %v160_v1 = vunpack.c.l.bf16 %v159_v0  ;;  %v274_v8 = vld [vmem:[%s607_s1] ss:$0 sm:$0xff]  ;;  %s196_s4 = sshll.u32 %s158_s3, 4  ;;  %vm180_vm1 = vcmask 257024   ;;  %s562_s7 = scalar_lea.hbm %s608_s2, %s276_s20  ;;  %s564_s4 = int_to_ptr.vmem [resolvable:$true] %s196_s4 }
  0x39   : > { %s183_s8 = scalar_lea.sflag [#allocation4], %s547_s25  ;;  %s357_s14 = scalar_lea.vmem %s564_s4, 64 }
  0x3a   : > { %v161_v2 = vmul.f32 %v160_v1, %v160_v1  ;;  %p358_p6 = scmp.ne.s32.totalorder %s564_s4, %s357_s14  ;;  %p617_p11 = scmp.ne.s32.totalorder %s612_s21, 0 }
  0x3b   : > { %s426_s13 = smov [#allocation5]  }
  0x3c   : > { %v163_v3 = vsel %vm162_vm0, %v161_v2, 0.0  ;;  %p359_p12 = pnand %p358_p6, %p617_p11  ;;  %s361_s16 = sshll.u32 %s426_s13, 4  ;;  %s362_s16 = int_to_ptr.vmem [resolvable:$false] %s361_s16 }
  0x3d   : > { %164 = vadd.xlane.f32.xlu0 %v163_v3  ;;  %s363_s17 = scalar_lea.vmem %s362_s16, 128  ;;  %p364_p7 = scmp.lt.s32.totalorder %s564_s4, %s362_s16 }
  0x3e   : > { %p360_p13 = pneg %p359_p12  ;;  %p365_p10 = scmp.lt.s32.totalorder %s363_s17, %s357_s14 }
  0x40   : > { %p366_p2 = por %p365_p10, %p364_p7 }
  0x42   : > { %p367_p4 = pnand %p366_p2, %p360_p13 }
  0xca   : > { %v165_v4 = vpop.xlane.xlu0 %164 }
  0xcb   : > { %v167_v5 = vmul.f32 0.03125, %v165_v4 }
  0xcd   : > { %v168_v6 = vadd.f32 1e-06, %v167_v5 }
  0xcf   : > { %325 = vrsqrt.f32 %v168_v6 }
  0xd9   : > { %v326_v7 = vpop.eup %325 }
  0xda   : > { %v170_v9 = vmul.f32 %v326_v7, %v160_v1 }
  0xdc   : > { %v178_v10 = vmul.f32 %v274_v8, %v170_v9 }
  0xde   : > { %v179_v11 = vpack.c.bf16 %v178_v10, %v178_v10 }
  0xe0   : > { %181 = vst.msk [vmem:[%s158_s3] sm:$0xf] %vm180_vm1, %v179_v11 }
  0xe1   : > { %370 = shalt.err (!%p367_p4)
}
  0xe2   : > { %s371_s19 = scalar_lea.hbm %s562_s7, 64  ;;  %s375_s25 = scalar_lea.hbm %s608_s2, 128 }
  0xe3   : > { %p372_p5 = scmp.ne.s32.totalorder %s562_s7, %s371_s19  ;;  %p376_p0 = scmp.lt.u32.totalorder %s562_s7, %s608_s2 }
  0xe4   : > { %p377_p1 = scmp.lt.u32.totalorder %s375_s25, %s371_s19  ;;  %p379_p6 = scmp.lt.u32.totalorder %s371_s19, %s562_s7 }
  0xe5   : > { %p373_p8 = pnand %p372_p5, %p617_p11 }
  0xe6   : > { %p378_p3 = por %p377_p1, %p376_p0 }
  0xe7   : > { %p374_p9 = pneg %p373_p8 }
  0xe8   : > { %p380_p12 = por %p379_p6, %p378_p3 }
  0xea   : > { %p381_p13 = pnand %p380_p12, %p374_p9 }
  0xec   : > { %384 = shalt.err (!%p381_p13)
}
  0xed   : > { %281 = dma.vmem_to_hbm [thread:$0]  (%p617_p11), %s564_s4, 64, %s562_s7, %s183_s8  }
  0xee PF: > { %s208_s29 = sand.u32 1, %s411_s9   ;;  %p618_p7 = scmp.ne.s32.totalorder %s613_s22, 0 }
  0xef   : > { %p619_p10 = scmp.ge.s32.totalorder %s423_s12, 2  ;;  %s209_s28 = scalar_lea.sflag [#allocation4], %s208_s29 }
  0xf1   : > { %p288_p2 = pnand %p619_p10, %p618_p7 }
  0xf3   : > { %406 = dma.done.wait (!%p288_p2), %s209_s28, 64  }
  0xf4   : > { %408 = vsyncadd (!%p288_p2), %s209_s28, 4294967232  ;;  %p15_p4 = scmp.ge.s32.totalorder %s467_s15, 4   ;;  %s620_s9 = smov %s415_s10 }
  0xf5   : > { %s621_s10 = smov %s419_s11  ;;  %s622_s11 = smov %s479_s18 }
  0xf6   : > { %s623_s12 = smov %s467_s15  ;;  %17 = sbr.rel (!%p15_p4) target bundleno = 5 (0x5), region = 73 }
  0xfd   :  { %214 = vsyncpa [#allocation3], 1 }
  0xfe   :  { %216 = vsyncpa [#allocation3 + $0x1], 1 }
  0xff   :  { %217 = vsyncpa [#allocation4], 1 }
 0x100   :  { %219 = vsyncpa [#allocation4 + $0x1], 1 }

</bundles_post_ra>
